<compile_context>
chip_gen: v5e
topology: v5e:2x2
jax: 0.10.0
libtpu: 0.0.40
codegen_flags: <defaults>
</compile_context>

<pallas_src>
import functools

import jax
import jax.numpy as jnp
import numpy as np
from jax.experimental import pallas as pl
from jax.experimental.pallas import tpu as pltpu


def _dino_kernel(student_temp, n_views_t, n_views_s, batch, tb, tiles_per_split,
                 needs_mask, inv_tt_ref, *refs):
    t_refs = refs[:n_views_t]
    s_refs = refs[n_views_t:n_views_t + n_views_s]
    c_ref = refs[n_views_t + n_views_s]
    loss_ref = refs[n_views_t + n_views_s + 1]   # (1, 8, D) partial, resident accumulator
    tsum_ref = refs[n_views_t + n_views_s + 2]   # (1, 8, D) partial, resident accumulator

    split = pl.program_id(0)
    step = pl.program_id(1)

    @pl.when(step == 0)
    def _init():
        loss_ref[...] = jnp.zeros_like(loss_ref)
        tsum_ref[...] = jnp.zeros_like(tsum_ref)

    inv_tt = inv_tt_ref[0]            # 1 / teacher_temp (runtime scalar, SMEM)
    inv_st = 1.0 / student_temp       # compile-time constant
    center = c_ref[...].astype(jnp.float32)       # (1, D)
    d = center.shape[-1]

    if needs_mask:
        # Tail / duplicated tiles: zero out rows past the real batch.
        row_start = (split * tiles_per_split + step) * tb
        rows_valid = batch - row_start
        row_ids = jax.lax.broadcasted_iota(jnp.int32, (tb, 1), 0)
        mask = row_ids < rows_valid
    else:
        mask = None

    # ---- teacher: sum of softmax probs over views + raw sum for the EMA center ----
    tp_sum = jnp.zeros((tb, d), jnp.float32)
    t_raw_sum = jnp.zeros((tb, d), jnp.float32)
    for t_ref in t_refs:
        t = t_ref[...].astype(jnp.float32)
        if mask is not None:
            t = jnp.where(mask, t, 0.0)
        t_raw_sum = t_raw_sum + t
        tl = (t - center) * inv_tt
        tl = tl - jnp.max(tl, axis=-1, keepdims=True)
        te = jnp.exp(tl)
        tp_sum = tp_sum + te * (1.0 / jnp.sum(te, axis=-1, keepdims=True))

    # ---- student: sum of log-softmax over views ----
    slp_sum = jnp.zeros((tb, d), jnp.float32)
    for s_ref in s_refs:
        sl = s_ref[...].astype(jnp.float32) * inv_st
        if mask is not None:
            sl = jnp.where(mask, sl, 0.0)
        sl = sl - jnp.max(sl, axis=-1, keepdims=True)
        lse = jnp.log(jnp.sum(jnp.exp(sl), axis=-1, keepdims=True))
        slp_sum = slp_sum + (sl - lse)

    # sum over all (teacher view, student view) pairs of -t_probs * s_logp,
    # kept per-row / per-lane to stay in the vector domain.
    contrib = -tp_sum * slp_sum                    # (tb, D)
    if mask is not None:
        contrib = jnp.where(mask, contrib, 0.0)

    # Accumulate at native (8, 128) vreg granularity: the (tb,D)->(tb//8,8,D) reshape
    # is a free view and the axis-0 sum is pure VPU adds.  The 8->1 sublane reduce is
    # deferred to the wrapper epilogue.
    sub = tb // 8
    loss_ref[...] += contrib.reshape(sub, 8, d).sum(axis=0).reshape(1, 8, d)
    tsum_ref[...] += t_raw_sum.reshape(sub, 8, d).sum(axis=0).reshape(1, 8, d)


def _round_up(x, m):
    return ((x + m - 1) // m) * m


@functools.partial(jax.jit, static_argnames=("student_temp", "center_momentum"))
def _dino_loss_call(teacher_views, student_views, teacher_temp, center, *,
                    student_temp, center_momentum):
    vt, vs = len(teacher_views), len(student_views)
    b, d = teacher_views[0].shape

    # ~512-row tiles: near the HBM-roofline knee, and (f32 temporaries included) fit
    # v7x's 64 MiB physical VMEM as well as v5e's raised scoped limit.
    tb = min(512, _round_up(b, 8))
    n_tiles = pl.cdiv(b, tb)
    # Leading "parallel" axis feeds both TensorCores on v7x; serial no-op elsewhere.
    num_splits = 2 if n_tiles > 1 else 1
    tiles_per_split = pl.cdiv(n_tiles, num_splits)
    needs_mask = (num_splits * tiles_per_split * tb) != b

    if num_splits * tiles_per_split == n_tiles:
        def view_map(split, step):
            return (split * tiles_per_split + step, 0)
    else:
        last_tile = n_tiles - 1

        def view_map(split, step):
            # Clamp duplicated trailing tiles; their rows are masked in-kernel.
            return (jnp.minimum(split * tiles_per_split + step, last_tile), 0)

    view_spec = pl.BlockSpec((tb, d), view_map)

    kernel = functools.partial(_dino_kernel, float(student_temp), vt, vs, b, tb,
                               tiles_per_split, needs_mask)

    inv_tt = jnp.reshape(1.0 / teacher_temp, (1,)).astype(jnp.float32)

    loss_part, tsum_part = pl.pallas_call(
        kernel,
        out_shape=(
            jax.ShapeDtypeStruct((num_splits, 8, d), jnp.float32),
            jax.ShapeDtypeStruct((num_splits, 8, d), jnp.float32),
        ),
        grid=(num_splits, tiles_per_split),
        in_specs=(
            [pl.BlockSpec(memory_space=pltpu.MemorySpace.SMEM)]        # 1/teacher_temp
            + [view_spec] * (vt + vs)                                  # per-view (B, D)
            + [pl.BlockSpec((1, d), lambda split, step: (0, 0))]       # center
        ),
        out_specs=(
            pl.BlockSpec((1, 8, d), lambda split, step: (split, 0, 0)),  # loss partials
            pl.BlockSpec((1, 8, d), lambda split, step: (split, 0, 0)),  # teacher sums
        ),
        compiler_params=pltpu.CompilerParams(
            dimension_semantics=("parallel", "arbitrary"),
            vmem_limit_bytes=48 * 1024 * 1024),
    )(inv_tt, *teacher_views, *student_views, center)

    # Tiny epilogue on (num_splits, 8, D) partials: finish means + EMA center update.
    loss = jnp.sum(loss_part) / (float(b) * float(vt) * float(vs))
    batch_center = (jnp.sum(tsum_part, axis=(0, 1)) / (float(vt) * float(b)))[None, :]
    new_center = center * center_momentum + (1.0 - center_momentum) * batch_center
    return loss, new_center


class DINOLoss:
    """JAX/Pallas port of the PyTorch DINOLoss module (forward pass only)."""

    def __init__(self, out_dim=512, student_temp=0.1, center_momentum=0.9):
        self.student_temp = float(student_temp)
        self.center_momentum = float(center_momentum)
        self.center = jnp.zeros((1, out_dim), jnp.float32)

    def __call__(self, student_outputs, teacher_outputs, teacher_temp):
        # Keep the caller's dtype (bf16 activations halve DMA bytes; the kernel
        # upcasts to f32 only after the load).
        s = tuple(jnp.asarray(x) for x in student_outputs)
        t = tuple(jnp.asarray(x) for x in teacher_outputs)
        loss, new_center = _dino_loss_call(
            t, s, jnp.asarray(teacher_temp, jnp.float32), self.center,
            student_temp=self.student_temp, center_momentum=self.center_momentum)
        # torch's `with torch.no_grad(): self.center = ...` buffer update, done
        # functionally: the kernel/epilogue return the new center, stored here.
        self.center = new_center
        return loss


def _reference(student_outputs, teacher_outputs, teacher_temp, center,
               student_temp, center_momentum):
    t_probs = [jax.nn.softmax((jnp.asarray(t, jnp.float32) - center) / teacher_temp, -1)
               for t in teacher_outputs]
    s_logp = [jax.nn.log_softmax(jnp.asarray(s, jnp.float32) / student_temp, -1)
              for s in student_outputs]
    total, n = 0.0, 0
    for tp in t_probs:
        for sl in s_logp:
            total = total + jnp.sum(-tp * sl, axis=-1).mean()
            n += 1
    batch_center = jnp.concatenate(
        [jnp.asarray(t, jnp.float32) for t in teacher_outputs], axis=0
    ).mean(axis=0, keepdims=True)
    new_center = center * center_momentum + (1.0 - center_momentum) * batch_center
    return total / n, new_center


if __name__ == "__main__":
    key = jax.random.PRNGKey(0)
    B, D = 8, 512          # out_dim=512 matches the module default; small batch
    n_views = 2
    keys = jax.random.split(key, 2 * n_views)
    student_outputs = [jax.random.normal(keys[i], (B, D), dtype=jnp.float32)
                       for i in range(n_views)]
    teacher_outputs = [jax.random.normal(keys[n_views + i], (B, D), dtype=jnp.float32)
                       for i in range(n_views)]

    loss_mod = DINOLoss(out_dim=D, student_temp=0.1, center_momentum=0.9)
    loss = loss_mod(student_outputs, teacher_outputs, teacher_temp=0.04)
    jax.block_until_ready((loss, loss_mod.center))

    ref_loss, ref_center = _reference(student_outputs, teacher_outputs, 0.04,
                                      jnp.zeros((1, D), jnp.float32), 0.1, 0.9)
    np.testing.assert_allclose(float(loss), float(ref_loss), rtol=1e-4, atol=1e-4)
    np.testing.assert_allclose(np.asarray(loss_mod.center), np.asarray(ref_center),
                               rtol=1e-4, atol=1e-5)

    print("KERNEL_OK")
</pallas_src>

<mosaic_0001>
module attributes {stable_mosaic.version = 11 : i64} {
  func.func @_dino_kernel(%arg0: i32, %arg1: i32, %arg2: memref<1xf32, #tpu.memory_space<smem>>, %arg3: memref<8x512xf32, #tpu.memory_space<vmem>>, %arg4: memref<8x512xf32, #tpu.memory_space<vmem>>, %arg5: memref<8x512xf32, #tpu.memory_space<vmem>>, %arg6: memref<8x512xf32, #tpu.memory_space<vmem>>, %arg7: memref<1x512xf32, #tpu.memory_space<vmem>>, %arg8: memref<1x8x512xf32, #tpu.memory_space<vmem>>, %arg9: memref<1x8x512xf32, #tpu.memory_space<vmem>>) attributes {dimension_semantics = [#tpu.dimension_semantics<parallel>, #tpu.dimension_semantics<arbitrary>], iteration_bounds = array<i64: 1, 1>, scalar_prefetch = 0 : i64, scratch_operands = 0 : i64, tpu.core_type = #tpu.core_type<tc>, window_params = [{transform_indices = @transform_0, window_bounds = array<i64: 1>}, {transform_indices = @transform_1, window_bounds = array<i64: 8, 512>}, {transform_indices = @transform_2, window_bounds = array<i64: 8, 512>}, {transform_indices = @transform_3, window_bounds = array<i64: 8, 512>}, {transform_indices = @transform_4, window_bounds = array<i64: 8, 512>}, {pipeline_mode = #tpu.pipeline_mode<synchronous>, transform_indices = @transform_5, window_bounds = array<i64: 1, 512>}, {transform_indices = @transform_6, window_bounds = array<i64: 1, 8, 512>}, {transform_indices = @transform_7, window_bounds = array<i64: 1, 8, 512>}]} {
    %c0_i32 = arith.constant 0 : i32
    %0 = arith.cmpi eq, %arg1, %c0_i32 : i32
    %1 = arith.extui %0 : i1 to i32
    %c0_i32_0 = arith.constant 0 : i32
    %2 = arith.cmpi ne, %1, %c0_i32_0 : i32
    scf.if %2 {
      %cst_40 = arith.constant 0.000000e+00 : f32
      %87 = vector.broadcast %cst_40 : f32 to vector<1x8x512xf32>
      %c0_41 = arith.constant 0 : index
      %c0_42 = arith.constant 0 : index
      %c0_43 = arith.constant 0 : index
      %88 = vector.load %arg8[%c0_41, %c0_42, %c0_43] : memref<1x8x512xf32, #tpu.memory_space<vmem>>, vector<1x8x512xf32>
      tpu.vector_store %arg8[%c0_41, %c0_42, %c0_43], %87 {strides = array<i32>} : memref<1x8x512xf32, #tpu.memory_space<vmem>>, vector<1x8x512xf32>,
      %cst_44 = arith.constant 0.000000e+00 : f32
      %89 = vector.broadcast %cst_44 : f32 to vector<1x8x512xf32>
      %c0_45 = arith.constant 0 : index
      %c0_46 = arith.constant 0 : index
      %c0_47 = arith.constant 0 : index
      %90 = vector.load %arg9[%c0_45, %c0_46, %c0_47] : memref<1x8x512xf32, #tpu.memory_space<vmem>>, vector<1x8x512xf32>
      tpu.vector_store %arg9[%c0_45, %c0_46, %c0_47], %89 {strides = array<i32>} : memref<1x8x512xf32, #tpu.memory_space<vmem>>, vector<1x8x512xf32>,
    } else {
    }
    %c0 = arith.constant 0 : index
    %3 = memref.load %arg2[%c0] : memref<1xf32, #tpu.memory_space<smem>>
    %c0_1 = arith.constant 0 : index
    %c0_2 = arith.constant 0 : index
    %4 = vector.load %arg7[%c0_1, %c0_2] : memref<1x512xf32, #tpu.memory_space<vmem>>, vector<1x512xf32>
    %cst = arith.constant 0.000000e+00 : f32
    %5 = vector.broadcast %cst : f32 to vector<8x512xf32>
    %cst_3 = arith.constant 0.000000e+00 : f32
    %6 = vector.broadcast %cst_3 : f32 to vector<8x512xf32>
    %c0_4 = arith.constant 0 : index
    %c0_5 = arith.constant 0 : index
    %7 = vector.load %arg3[%c0_4, %c0_5] : memref<8x512xf32, #tpu.memory_space<vmem>>, vector<8x512xf32>
    %8 = arith.addf %6, %7 : vector<8x512xf32>
    %9 = vector.broadcast %4 : vector<1x512xf32> to vector<8x512xf32>
    %10 = arith.subf %7, %9 : vector<8x512xf32>
    %11 = vector.broadcast %3 : f32 to vector<8x512xf32>
    %12 = arith.mulf %10, %11 : vector<8x512xf32>
    %cst_6 = arith.constant dense<0xFF800000> : vector<8xf32>
    %13 = vector.multi_reduction <maximumf>, %12, %cst_6 [1] : vector<8x512xf32> to vector<8xf32>
    %14 = vector.shape_cast %13 : vector<8xf32> to vector<8x1xf32>
    %15 = vector.broadcast %14 : vector<8x1xf32> to vector<8x512xf32>
    %16 = arith.subf %12, %15 : vector<8x512xf32>
    %17 = math.exp %16 : vector<8x512xf32>
    %cst_7 = arith.constant dense<0.000000e+00> : vector<8xf32>
    %18 = vector.multi_reduction <add>, %17, %cst_7 [1] : vector<8x512xf32> to vector<8xf32>
    %19 = vector.shape_cast %18 : vector<8xf32> to vector<8x1xf32>
    %cst_8 = arith.constant 1.000000e+00 : f32
    %20 = vector.broadcast %cst_8 : f32 to vector<8x1xf32>
    %21 = arith.divf %20, %19 : vector<8x1xf32>
    %22 = vector.broadcast %21 : vector<8x1xf32> to vector<8x512xf32>
    %23 = arith.mulf %17, %22 : vector<8x512xf32>
    %24 = arith.addf %5, %23 : vector<8x512xf32>
    %c0_9 = arith.constant 0 : index
    %c0_10 = arith.constant 0 : index
    %25 = vector.load %arg4[%c0_9, %c0_10] : memref<8x512xf32, #tpu.memory_space<vmem>>, vector<8x512xf32>
    %26 = arith.addf %8, %25 : vector<8x512xf32>
    %27 = vector.broadcast %4 : vector<1x512xf32> to vector<8x512xf32>
    %28 = arith.subf %25, %27 : vector<8x512xf32>
    %29 = vector.broadcast %3 : f32 to vector<8x512xf32>
    %30 = arith.mulf %28, %29 : vector<8x512xf32>
    %cst_11 = arith.constant dense<0xFF800000> : vector<8xf32>
    %31 = vector.multi_reduction <maximumf>, %30, %cst_11 [1] : vector<8x512xf32> to vector<8xf32>
    %32 = vector.shape_cast %31 : vector<8xf32> to vector<8x1xf32>
    %33 = vector.broadcast %32 : vector<8x1xf32> to vector<8x512xf32>
    %34 = arith.subf %30, %33 : vector<8x512xf32>
    %35 = math.exp %34 : vector<8x512xf32>
    %cst_12 = arith.constant dense<0.000000e+00> : vector<8xf32>
    %36 = vector.multi_reduction <add>, %35, %cst_12 [1] : vector<8x512xf32> to vector<8xf32>
    %37 = vector.shape_cast %36 : vector<8xf32> to vector<8x1xf32>
    %cst_13 = arith.constant 1.000000e+00 : f32
    %38 = vector.broadcast %cst_13 : f32 to vector<8x1xf32>
    %39 = arith.divf %38, %37 : vector<8x1xf32>
    %40 = vector.broadcast %39 : vector<8x1xf32> to vector<8x512xf32>
    %41 = arith.mulf %35, %40 : vector<8x512xf32>
    %42 = arith.addf %24, %41 : vector<8x512xf32>
    %cst_14 = arith.constant 0.000000e+00 : f32
    %43 = vector.broadcast %cst_14 : f32 to vector<8x512xf32>
    %c0_15 = arith.constant 0 : index
    %c0_16 = arith.constant 0 : index
    %44 = vector.load %arg5[%c0_15, %c0_16] : memref<8x512xf32, #tpu.memory_space<vmem>>, vector<8x512xf32>
    %cst_17 = arith.constant 1.000000e+01 : f32
    %45 = vector.broadcast %cst_17 : f32 to vector<8x512xf32>
    %46 = arith.mulf %44, %45 : vector<8x512xf32>
    %cst_18 = arith.constant dense<0xFF800000> : vector<8xf32>
    %47 = vector.multi_reduction <maximumf>, %46, %cst_18 [1] : vector<8x512xf32> to vector<8xf32>
    %48 = vector.shape_cast %47 : vector<8xf32> to vector<8x1xf32>
    %49 = vector.broadcast %48 : vector<8x1xf32> to vector<8x512xf32>
    %50 = arith.subf %46, %49 : vector<8x512xf32>
    %51 = math.exp %50 : vector<8x512xf32>
    %cst_19 = arith.constant dense<0.000000e+00> : vector<8xf32>
    %52 = vector.multi_reduction <add>, %51, %cst_19 [1] : vector<8x512xf32> to vector<8xf32>
    %53 = vector.shape_cast %52 : vector<8xf32> to vector<8x1xf32>
    %54 = math.log %53 : vector<8x1xf32>
    %55 = vector.broadcast %54 : vector<8x1xf32> to vector<8x512xf32>
    %56 = arith.subf %50, %55 : vector<8x512xf32>
    %57 = arith.addf %43, %56 : vector<8x512xf32>
    %c0_20 = arith.constant 0 : index
    %c0_21 = arith.constant 0 : index
    %58 = vector.load %arg6[%c0_20, %c0_21] : memref<8x512xf32, #tpu.memory_space<vmem>>, vector<8x512xf32>
    %cst_22 = arith.constant 1.000000e+01 : f32
    %59 = vector.broadcast %cst_22 : f32 to vector<8x512xf32>
    %60 = arith.mulf %58, %59 : vector<8x512xf32>
    %cst_23 = arith.constant dense<0xFF800000> : vector<8xf32>
    %61 = vector.multi_reduction <maximumf>, %60, %cst_23 [1] : vector<8x512xf32> to vector<8xf32>
    %62 = vector.shape_cast %61 : vector<8xf32> to vector<8x1xf32>
    %63 = vector.broadcast %62 : vector<8x1xf32> to vector<8x512xf32>
    %64 = arith.subf %60, %63 : vector<8x512xf32>
    %65 = math.exp %64 : vector<8x512xf32>
    %cst_24 = arith.constant dense<0.000000e+00> : vector<8xf32>
    %66 = vector.multi_reduction <add>, %65, %cst_24 [1] : vector<8x512xf32> to vector<8xf32>
    %67 = vector.shape_cast %66 : vector<8xf32> to vector<8x1xf32>
    %68 = math.log %67 : vector<8x1xf32>
    %69 = vector.broadcast %68 : vector<8x1xf32> to vector<8x512xf32>
    %70 = arith.subf %64, %69 : vector<8x512xf32>
    %71 = arith.addf %57, %70 : vector<8x512xf32>
    %cst_25 = arith.constant 0.000000e+00 : f32
    %72 = vector.broadcast %cst_25 : f32 to vector<8x512xf32>
    %73 = arith.subf %72, %42 : vector<8x512xf32>
    %74 = arith.mulf %73, %71 : vector<8x512xf32>
    %c0_26 = arith.constant 0 : index
    %c0_27 = arith.constant 0 : index
    %c0_28 = arith.constant 0 : index
    %75 = vector.load %arg8[%c0_26, %c0_27, %c0_28] : memref<1x8x512xf32, #tpu.memory_space<vmem>>, vector<1x8x512xf32>
    %76 = vector.shape_cast %74 : vector<8x512xf32> to vector<1x8x512xf32>
    %cst_29 = arith.constant dense<0.000000e+00> : vector<8x512xf32>
    %77 = vector.multi_reduction <add>, %76, %cst_29 [0] : vector<1x8x512xf32> to vector<8x512xf32>
    %78 = vector.shape_cast %77 : vector<8x512xf32> to vector<1x8x512xf32>
    %79 = arith.addf %75, %78 : vector<1x8x512xf32>
    %c0_30 = arith.constant 0 : index
    %c0_31 = arith.constant 0 : index
    %c0_32 = arith.constant 0 : index
    %80 = vector.load %arg8[%c0_30, %c0_31, %c0_32] : memref<1x8x512xf32, #tpu.memory_space<vmem>>, vector<1x8x512xf32>
    tpu.vector_store %arg8[%c0_30, %c0_31, %c0_32], %79 {strides = array<i32>} : memref<1x8x512xf32, #tpu.memory_space<vmem>>, vector<1x8x512xf32>,
    %c0_33 = arith.constant 0 : index
    %c0_34 = arith.constant 0 : index
    %c0_35 = arith.constant 0 : index
    %81 = vector.load %arg9[%c0_33, %c0_34, %c0_35] : memref<1x8x512xf32, #tpu.memory_space<vmem>>, vector<1x8x512xf32>
    %82 = vector.shape_cast %26 : vector<8x512xf32> to vector<1x8x512xf32>
    %cst_36 = arith.constant dense<0.000000e+00> : vector<8x512xf32>
    %83 = vector.multi_reduction <add>, %82, %cst_36 [0] : vector<1x8x512xf32> to vector<8x512xf32>
    %84 = vector.shape_cast %83 : vector<8x512xf32> to vector<1x8x512xf32>
    %85 = arith.addf %81, %84 : vector<1x8x512xf32>
    %c0_37 = arith.constant 0 : index
    %c0_38 = arith.constant 0 : index
    %c0_39 = arith.constant 0 : index
    %86 = vector.load %arg9[%c0_37, %c0_38, %c0_39] : memref<1x8x512xf32, #tpu.memory_space<vmem>>, vector<1x8x512xf32>
    tpu.vector_store %arg9[%c0_37, %c0_38, %c0_39], %85 {strides = array<i32>} : memref<1x8x512xf32, #tpu.memory_space<vmem>>, vector<1x8x512xf32>,
    return
  }
  func.func @transform_0(%arg0: i32, %arg1: i32) -> i32 {
    %c0_i32 = arith.constant 0 : i32
    %c0_i32_0 = arith.constant 0 : i32
    return %c0_i32 : i32
  }
  func.func @transform_1(%arg0: i32, %arg1: i32) -> (i32, i32) {
    %c1_i32 = arith.constant 1 : i32
    %0 = arith.muli %arg0, %c1_i32 : i32
    %1 = arith.addi %0, %arg1 : i32
    %c0_i32 = arith.constant 0 : i32
    %c0_i32_0 = arith.constant 0 : i32
    return %1, %c0_i32 : i32, i32
  }
  func.func @transform_2(%arg0: i32, %arg1: i32) -> (i32, i32) {
    %c1_i32 = arith.constant 1 : i32
    %0 = arith.muli %arg0, %c1_i32 : i32
    %1 = arith.addi %0, %arg1 : i32
    %c0_i32 = arith.constant 0 : i32
    %c0_i32_0 = arith.constant 0 : i32
    return %1, %c0_i32 : i32, i32
  }
  func.func @transform_3(%arg0: i32, %arg1: i32) -> (i32, i32) {
    %c1_i32 = arith.constant 1 : i32
    %0 = arith.muli %arg0, %c1_i32 : i32
    %1 = arith.addi %0, %arg1 : i32
    %c0_i32 = arith.constant 0 : i32
    %c0_i32_0 = arith.constant 0 : i32
    return %1, %c0_i32 : i32, i32
  }
  func.func @transform_4(%arg0: i32, %arg1: i32) -> (i32, i32) {
    %c1_i32 = arith.constant 1 : i32
    %0 = arith.muli %arg0, %c1_i32 : i32
    %1 = arith.addi %0, %arg1 : i32
    %c0_i32 = arith.constant 0 : i32
    %c0_i32_0 = arith.constant 0 : i32
    return %1, %c0_i32 : i32, i32
  }
  func.func @transform_5(%arg0: i32, %arg1: i32) -> (i32, i32) {
    %c0_i32 = arith.constant 0 : i32
    %c0_i32_0 = arith.constant 0 : i32
    %c0_i32_1 = arith.constant 0 : i32
    return %c0_i32, %c0_i32_0 : i32, i32
  }
  func.func @transform_6(%arg0: i32, %arg1: i32) -> (i32, i32, i32) {
    %c0_i32 = arith.constant 0 : i32
    %c0_i32_0 = arith.constant 0 : i32
    %c0_i32_1 = arith.constant 0 : i32
    return %arg0, %c0_i32, %c0_i32_0 : i32, i32, i32
  }
  func.func @transform_7(%arg0: i32, %arg1: i32) -> (i32, i32, i32) {
    %c0_i32 = arith.constant 0 : i32
    %c0_i32_0 = arith.constant 0 : i32
    %c0_i32_1 = arith.constant 0 : i32
    return %arg0, %c0_i32, %c0_i32_0 : i32, i32, i32
  }
}

</mosaic_0001>

<bundles_post_ra>
// kernel: _dino_loss_call.1
= control target key start
LH: loop header
LB: loop body
LE: loop exit
PB: predicated region body
PF: predicated region fallthrough
CT: control target
= control target key end

     0   :  { %14 = vsyncpa [#allocation4], 0  ;;  %s683_s0 = inlined_call_operand.<no memory space> [shape: f32[1], index: 0, kind: input, shape index: {}]   ;;  %s684_s1 = inlined_call_operand.hbm [shape: f32[8,512], index: 1, kind: input, shape index: {}]   ;;  %s685_s2 = inlined_call_operand.hbm [shape: f32[8,512], index: 2, kind: input, shape index: {}]   ;;  %s686_s3 = inlined_call_operand.hbm [shape: f32[8,512], index: 3, kind: input, shape index: {}]   ;;  %s687_s4 = inlined_call_operand.hbm [shape: f32[8,512], index: 4, kind: input, shape index: {}]   ;;  %s688_s5 = inlined_call_operand.vmem [shape: f32[1,512], index: 5, kind: input, shape index: {}]   ;;  %s689_s6 = inlined_call_operand.vmem [shape: f32[1,8,512], index: 6, kind: output, shape index: {0}]   ;;  %s690_s7 = inlined_call_operand.vmem [shape: f32[1,8,512], index: 7, kind: output, shape index: {1}]  }
   0x1   :  { %15 = vsyncpa [#allocation6], 0  ;;  %s43_s26 = sshll.u32 %s685_s2, 4  ;;  %s44_s26 = int_to_ptr.hbm [resolvable:$true] %s43_s26 }
   0x2   :  { %16 = vsyncpa [#allocation9], 0  ;;  %s525_s27 = smov [#allocation5]   ;;  %s28_s8 = sshll.u32 %s684_s1, 4  ;;  %s29_s8 = int_to_ptr.hbm [resolvable:$true] %s28_s8 }
   0x3   :  { %s45_s28 = sshll.u32 %s525_s27, 4  ;;  %s526_s9 = smov [#allocation3]   ;;  %s46_s28 = int_to_ptr.vmem [resolvable:$true] %s45_s28 }
   0x4   :  { %48 = dma.hbm_to_vmem [thread:$0]  %s44_s26, 512, %s46_s28, [#allocation6]  }
   0x5   :  { %s30_s10 = sshll.u32 %s526_s9, 4  ;;  %s58_s13 = sshll.u32 %s686_s3, 4  ;;  %s31_s10 = int_to_ptr.vmem [resolvable:$true] %s30_s10  ;;  %s59_s13 = int_to_ptr.hbm [resolvable:$true] %s58_s13 }
   0x6   :  { %33 = dma.hbm_to_vmem [thread:$0]  %s29_s8, 512, %s31_s10, [#allocation4]  }
   0x7   :  { %s73_s15 = sshll.u32 %s687_s4, 4  ;;  %s527_s16 = smov [#allocation7]   ;;  %s74_s15 = int_to_ptr.hbm [resolvable:$true] %s73_s15 }
   0x8   :  { %s60_s17 = sshll.u32 %s527_s16, 4  ;;  %s528_s1 = smov [#allocation8]   ;;  %s61_s17 = int_to_ptr.vmem [resolvable:$true] %s60_s17 }
   0x9   :  { %63 = dma.hbm_to_vmem [thread:$0]  %s59_s13, 512, %s61_s17, [#allocation6]  }
   0xa   :  { %s75_s18 = sshll.u32 %s528_s1, 4  ;;  %s76_s18 = int_to_ptr.vmem [resolvable:$true] %s75_s18 }
   0xb   :  { %78 = dma.hbm_to_vmem [thread:$0]  %s74_s15, 512, %s76_s18, [#allocation9]  }
   0xc   :  { %519 = dma.done.wait [#allocation4], 512  }
   0xd   :  { %520 = vsyncadd [#allocation4], 4294966784 }
   0xe   :  { %521 = dma.done.wait [#allocation6], 1024  }
   0xf   :  { %522 = vsyncadd [#allocation6], 4294966272 }
  0x10   :  { %523 = dma.done.wait [#allocation9], 512  }
  0x11   :  { %524 = vsyncadd [#allocation9], 4294966784  ;;  %v247_v0 = vld [vmem:[#allocation7] sm:$0xff]  ;;  %v248_v1 = vld [vmem:[#allocation7 + $0x8] sm:$0xff]  ;;  %v136_v18 = vstv %s683_s0 }
  0x12   :  { %v249_v2 = vld [vmem:[#allocation7 + $0x10] sm:$0xff]  ;;  %v250_v3 = vld [vmem:[#allocation7 + $0x18] sm:$0xff]  ;;  %v581_v4 = vmul.f32 10.0, %v247_v0  ;;  %v583_v5 = vmul.f32 10.0, %v248_v1  ;;  %v114_v7 = vld [vmem:[%s688_s5] sm:$0xf] }
  0x13   :  { %v585_v6 = vmul.f32 10.0, %v249_v2  ;;  %v590_v8 = vmul.f32 10.0, %v250_v3  ;;  %v115_v9 = vld [vmem:[#allocation3] sm:$0xff]  ;;  %v116_v10 = vld [vmem:[#allocation3 + $0x8] sm:$0xff]  ;;  %v117_v11 = vld [vmem:[#allocation3 + $0x10] sm:$0xff]  ;;  %v124_v12 = vperm.slane %v114_v7, 0 }
  0x14   :  { %v125_v13 = vperm.slane %v114_v7, 1  ;;  %v255_v14 = vmax.f32 %v581_v4, %v583_v5  ;;  %v118_v15 = vld [vmem:[#allocation3 + $0x18] sm:$0xff]  ;;  %v126_v16 = vperm.slane %v114_v7, 2  ;;  %v127_v17 = vperm.slane %v114_v7, 3  ;;  %v186_v19 = vld [vmem:[#allocation5] sm:$0xff]  ;;  %v187_v23 = vld [vmem:[#allocation5 + $0x8] sm:$0xff] }
  0x15   :  { %v256_v20 = vmax.f32 %v585_v6, %v590_v8  ;;  %v132_v21 = vsub.f32 %v115_v9, %v124_v12  ;;  %v188_v24 = vld [vmem:[#allocation5 + $0x10] sm:$0xff]  ;;  %v190_v25 = vadd.f32 %v186_v19, %v115_v9  ;;  %v189_v28 = vld [vmem:[#allocation5 + $0x18] sm:$0xff]  ;;  %v191_v29 = vadd.f32 %v187_v23, %v116_v10  ;;  %v287_v31 = vld [vmem:[#allocation8] sm:$0xff] }
  0x16   :  { %v133_v22 = vsub.f32 %v116_v10, %v125_v13  ;;  %v134_v26 = vsub.f32 %v117_v11, %v126_v16  ;;  %v135_v27 = vsub.f32 %v118_v15, %v127_v17  ;;  %v192_v30 = vadd.f32 %v188_v24, %v117_v11  ;;  %v288_v36 = vld [vmem:[#allocation8 + $0x8] sm:$0xff]  ;;  %v289_v37 = vld [vmem:[#allocation8 + $0x10] sm:$0xff]  ;;  %v290_v38 = vld [vmem:[#allocation8 + $0x18] sm:$0xff] }
  0x17   :  { %v257_v32 = vmax.f32 %v255_v14, %v256_v20  ;;  %v137_v33 = vmul.f32 %v136_v18, %v132_v21  ;;  %v193_v35 = vadd.f32 %v189_v28, %v118_v15  ;;  %v291_v42 = vmul.f32 10.0, %v287_v31  ;;  %363 = vst [vmem:[%s690_s7] sm:$0xff] %v190_v25 }
  0x18   :  { %v138_v34 = vmul.f32 %v136_v18, %v133_v22  ;;  %v139_v39 = vmul.f32 %v136_v18, %v134_v26  ;;  %v140_v40 = vmul.f32 %v136_v18, %v135_v27  ;;  %v292_v44 = vmul.f32 10.0, %v288_v36  ;;  %364 = vst [vmem:[%s690_s7 + $0x8] sm:$0xff] %v191_v29 }
  0x19   :  { %258 = vmax.xlane.f32.xlu1 %v257_v32  ;;  %v293_v45 = vmul.f32 10.0, %v289_v37  ;;  %v294_v46 = vmul.f32 10.0, %v290_v38  ;;  %v194_v47 = vsub.f32 %v186_v19, %v124_v12  ;;  %v195_v48 = vsub.f32 %v187_v23, %v125_v13  ;;  %365 = vst [vmem:[%s690_s7 + $0x10] sm:$0xff] %v192_v30 }
  0x1a   :  { %v141_v41 = vmax.f32 %v137_v33, %v138_v34  ;;  %v142_v43 = vmax.f32 %v139_v39, %v140_v40  ;;  %v196_v49 = vsub.f32 %v188_v24, %v126_v16  ;;  %v197_v50 = vsub.f32 %v189_v28, %v127_v17  ;;  %366 = vst [vmem:[%s690_s7 + $0x18] sm:$0xff] %v193_v35 }
  0x1b   :  { %v295_v52 = vmax.f32 %v291_v42, %v292_v44  ;;  %v296_v53 = vmax.f32 %v293_v45, %v294_v46  ;;  %v198_v54 = vmul.f32 %v194_v47, %v136_v18  ;;  %v199_v55 = vmul.f32 %v195_v48, %v136_v18 }
  0x1c   :  { %v143_v51 = vmax.f32 %v141_v41, %v142_v43  ;;  %v611_v56 = vmul.f32 %v196_v49, %v136_v18  ;;  %v613_v57 = vmul.f32 %v197_v50, %v136_v18 }
  0x1d   :  { %v297_v58 = vmax.f32 %v295_v52, %v296_v53  ;;  %v202_v59 = vmax.f32 %v198_v54, %v199_v55 }
  0x1e   :  { %144 = vmax.xlane.f32.xlu0 %v143_v51  ;;  %v203_v60 = vmax.f32 %v611_v56, %v613_v57 }
  0x20   :  { %v204_v61 = vmax.f32 %v202_v59, %v203_v60 }
  0x21   :  { %298 = vmax.xlane.f32.xlu1 %v297_v58 }
  0x26   :  { %205 = vmax.xlane.f32.xlu0 %v204_v61 }
  0x8c   :  { %v259_v62 = vpop.xlane.xlu1 %258 }
  0x8d   :  { %v618_v63 = vsub.f32 %v581_v4, %v259_v62  ;;  %v621_v0 = vsub.f32 %v583_v5, %v259_v62  ;;  %v624_v1 = vsub.f32 %v585_v6, %v259_v62  ;;  %v627_v2 = vsub.f32 %v590_v8, %v259_v62 }
  0x8f   :  { %v264_v3 = vmul.f32 1.442695, %v618_v63  ;;  %v266_v7 = vmul.f32 1.442695, %v621_v0  ;;  %v268_v9 = vmul.f32 1.442695, %v624_v1 }
  0x90   :  { %v270_v10 = vmul.f32 1.442695, %v627_v2 }
  0x91   :  { %383 = vpow2.f32 %v264_v3  ;;  %v145_v4 = vpop.xlane.xlu0 %144 }
  0x92   :  { %385 = vpow2.f32 %v266_v7  ;;  %v146_v11 = vsub.f32 %v137_v33, %v145_v4  ;;  %v147_v5 = vsub.f32 %v138_v34, %v145_v4  ;;  %v148_v12 = vsub.f32 %v139_v39, %v145_v4 }
  0x93   :  { %387 = vpow2.f32 %v268_v9  ;;  %v149_v6 = vsub.f32 %v140_v40, %v145_v4 }
  0x94   :  { %389 = vpow2.f32 %v270_v10  ;;  %v150_v13 = vmul.f32 1.442695, %v146_v11  ;;  %v152_v8 = vmul.f32 1.442695, %v147_v5  ;;  %v154_v14 = vmul.f32 1.442695, %v148_v12  ;;  %v299_v15 = vpop.xlane.xlu1 %298 }
  0x95   :  { %v156_v16 = vmul.f32 1.442695, %v149_v6  ;;  %v633_v17 = vsub.f32 %v291_v42, %v299_v15  ;;  %v635_v18 = vsub.f32 %v292_v44, %v299_v15  ;;  %v637_v19 = vsub.f32 %v293_v45, %v299_v15 }
  0x96   :  { %391 = vpow2.f32 %v150_v13  ;;  %v639_v20 = vsub.f32 %v294_v46, %v299_v15 }
  0x97   :  { %v384_v21 = vpop.eup %383  ;;  %393 = vpow2.f32 %v152_v8  ;;  %v304_v22 = vmul.f32 1.442695, %v633_v17  ;;  %v306_v23 = vmul.f32 1.442695, %v635_v18  ;;  %v308_v25 = vmul.f32 1.442695, %v637_v19 }
  0x98   :  { %v386_v24 = vpop.eup %385  ;;  %395 = vpow2.f32 %v154_v14  ;;  %v310_v27 = vmul.f32 1.442695, %v639_v20 }
  0x99   :  { %v388_v26 = vpop.eup %387  ;;  %397 = vpow2.f32 %v156_v16  ;;  %v206_v28 = vpop.xlane.xlu0 %205  ;;  %v272_v29 = vadd.f32 %v386_v24, %v384_v21 }
  0x9a   :  { %v390_v30 = vpop.eup %389  ;;  %399 = vpow2.f32 %v304_v22  ;;  %v207_v31 = vsub.f32 %v198_v54, %v206_v28  ;;  %v208_v32 = vsub.f32 %v199_v55, %v206_v28  ;;  %v209_v33 = vsub.f32 %v611_v56, %v206_v28 }
  0x9b   :  { %401 = vpow2.f32 %v306_v23  ;;  %v210_v34 = vsub.f32 %v613_v57, %v206_v28  ;;  %v273_v35 = vadd.f32 %v388_v26, %v272_v29 }
  0x9c   :  { %v647_v36 = vpop.eup %391  ;;  %403 = vpow2.f32 %v308_v25  ;;  %v211_v37 = vmul.f32 1.442695, %v207_v31  ;;  %v213_v38 = vmul.f32 1.442695, %v208_v32  ;;  %v215_v40 = vmul.f32 1.442695, %v209_v33 }
  0x9d   :  { %v649_v39 = vpop.eup %393  ;;  %405 = vpow2.f32 %v310_v27  ;;  %v274_v41 = vadd.f32 %v390_v30, %v273_v35  ;;  %v217_v45 = vmul.f32 1.442695, %v210_v34 }
  0x9e   :  { %v651_v42 = vpop.eup %395  ;;  %407 = vpow2.f32 %v211_v37  ;;  %v158_v43 = vadd.f32 %v649_v39, %v647_v36 }
  0x9f   :  { %v655_v44 = vpop.eup %397  ;;  %409 = vpow2.f32 %v213_v38  ;;  %275 = vadd.xlane.f32.xlu0 %v274_v41 }
  0xa0   :  { %v400_v46 = vpop.eup %399  ;;  %v159_v47 = vadd.f32 %v651_v42, %v158_v43  ;;  %411 = vpow2.f32 %v215_v40 }
  0xa1   :  { %v402_v48 = vpop.eup %401  ;;  %413 = vpow2.f32 %v217_v45 }
  0xa2   :  { %v404_v49 = vpop.eup %403  ;;  %v160_v50 = vadd.f32 %v655_v44, %v159_v47  ;;  %v312_v51 = vadd.f32 %v402_v48, %v400_v46 }
  0xa3   :  { %v406_v52 = vpop.eup %405 }
  0xa4   :  { %v408_v53 = vpop.eup %407  ;;  %161 = vadd.xlane.f32.xlu2 %v160_v50  ;;  %v313_v54 = vadd.f32 %v404_v49, %v312_v51 }
  0xa5   :  { %v410_v55 = vpop.eup %409 }
  0xa6   :  { %v314_v56 = vadd.f32 %v406_v52, %v313_v54  ;;  %v219_v57 = vadd.f32 %v410_v55, %v408_v53  ;;  %v412_v58 = vpop.eup %411 }
  0xa7   :  { %v414_v60 = vpop.eup %413 }
  0xa8   :  { %315 = vadd.xlane.f32.xlu1 %v314_v56  ;;  %v220_v59 = vadd.f32 %v412_v58, %v219_v57 }
  0xaa   :  { %v221_v61 = vadd.f32 %v414_v60, %v220_v59 }
  0xac   :  { %222 = vadd.xlane.f32.xlu2 %v221_v61 }
 0x112   :  { %v276_v11 = vpop.xlane.xlu0 %275 }
 0x117   :  { %v162_v62 = vpop.xlane.xlu2 %161 }
 0x118   :  { %415 = vrcp.f32 %v162_v62  ;;  %v174_v13 = vand.u32 2147483648, %v162_v62  ;;  %vm168_vm1 = vweird.f32 %v162_v62  ;;  %v172_v15 = vand.u32 2147483647, %v162_v62 }
 0x11a   :  { %v175_v23 = vor.u32 1.1754944e-38, %v174_v13  ;;  %vm173_vm3 = vcmp.eq.f32.partialorder %v172_v15, 8.507059e+37 }
 0x11b   :  { %v316_v9 = vpop.xlane.xlu1 %315 }
 0x11e   :  { %v416_v3 = vpop.eup %415 }
 0x11f   :  { %v164_v7 = vmul.f32 %v416_v3, %v162_v62  ;;  %v223_v10 = vpop.xlane.xlu2 %222  ;;  %vm169_vm0 = vweird.f32 %v416_v3 }
 0x120   :  { %417 = vrcp.f32 %v223_v10  ;;  %vm170_vm2 = vmor %vm168_vm1, %vm169_vm0  ;;  %v233_v25 = vand.u32 2147483647, %v223_v10  ;;  %v235_v26 = vand.u32 2147483648, %v223_v10  ;;  %vm229_vm5 = vweird.f32 %v223_v10 }
 0x121   :  { %v165_v4 = vsub.f32 1.0, %v164_v7  ;;  %419 = vlog2.f32 %v316_v9 }
 0x122   :  { %421 = vlog2.f32 %v276_v11  ;;  %vm234_vm7 = vcmp.eq.f32.partialorder %v233_v25, 8.507059e+37  ;;  %v236_v33 = vor.u32 1.1754944e-38, %v235_v26 }
 0x123   :  { %v166_v5 = vmul.f32 %v416_v3, %v165_v4 }
 0x125   :  { %v167_v6 = vadd.f32 %v416_v3, %v166_v5 }
 0x126   :  { %v418_v12 = vpop.eup %417 }
 0x127   :  { %v225_v8 = vmul.f32 %v418_v12, %v223_v10  ;;  %v420_v14 = vpop.eup %419  ;;  %v171_v16 = vsel %vm170_vm2, %v416_v3, %v167_v6  ;;  %vm230_vm4 = vweird.f32 %v418_v12 }
 0x128   :  { %v422_v22 = vpop.eup %421  ;;  %v318_v24 = vmul.f32 0.6931472, %v420_v14  ;;  %v176_v28 = vsel %vm173_vm3, %v175_v23, %v171_v16  ;;  %vm231_vm6 = vmor %vm229_vm5, %vm230_vm4 }
 0x129   :  { %v226_v21 = vsub.f32 1.0, %v225_v8  ;;  %v278_v29 = vmul.f32 0.6931472, %v422_v22  ;;  %v178_v34 = vmul.f32 %v647_v36, %v176_v28  ;;  %v179_v40 = vmul.f32 %v649_v39, %v176_v28 }
 0x12a   :  { %v319_v31 = vsub.f32 %v633_v17, %v318_v24  ;;  %v320_v32 = vsub.f32 %v635_v18, %v318_v24  ;;  %v321_v35 = vsub.f32 %v637_v19, %v318_v24  ;;  %v322_v37 = vsub.f32 %v639_v20, %v318_v24 }
 0x12b   :  { %v227_v27 = vmul.f32 %v418_v12, %v226_v21  ;;  %v180_v41 = vmul.f32 %v651_v42, %v176_v28  ;;  %v181_v43 = vmul.f32 %v655_v44, %v176_v28  ;;  %v279_v48 = vsub.f32 %v618_v63, %v278_v29 }
 0x12c   :  { %v280_v36 = vsub.f32 %v621_v0, %v278_v29  ;;  %v281_v19 = vsub.f32 %v624_v1, %v278_v29  ;;  %v282_v20 = vsub.f32 %v627_v2, %v278_v29 }
 0x12d   :  { %v228_v30 = vadd.f32 %v418_v12, %v227_v27  ;;  %v323_v42 = vadd.f32 %v319_v31, %v279_v48 }
 0x12e   :  { %v324_v52 = vadd.f32 %v320_v32, %v280_v36  ;;  %v325_v44 = vadd.f32 %v321_v35, %v281_v19  ;;  %v326_v54 = vadd.f32 %v322_v37, %v282_v20 }
 0x12f   :  { %v232_v38 = vsel %vm231_vm6, %v418_v12, %v228_v30 }
 0x130   :  { %v237_v45 = vsel %vm234_vm7, %v236_v33, %v232_v38 }
 0x131   :  { %v239_v17 = vmul.f32 %v408_v53, %v237_v45  ;;  %v240_v46 = vmul.f32 %v410_v55, %v237_v45  ;;  %v241_v18 = vmul.f32 %v412_v58, %v237_v45  ;;  %v242_v47 = vmul.f32 %v414_v60, %v237_v45 }
 0x133   :  { %v243_v49 = vadd.f32 %v239_v17, %v178_v34  ;;  %v244_v50 = vadd.f32 %v240_v46, %v179_v40  ;;  %v245_v39 = vadd.f32 %v241_v18, %v180_v41  ;;  %v246_v51 = vadd.f32 %v242_v47, %v181_v43 }
 0x135   :  { %v327_v53 = vsub.f32 0.0, %v243_v49  ;;  %v328_v55 = vsub.f32 0.0, %v244_v50  ;;  %v329_v56 = vsub.f32 0.0, %v245_v39  ;;  %v330_v57 = vsub.f32 0.0, %v246_v51 }
 0x137   :  { %v331_v58 = vmul.f32 %v327_v53, %v323_v42  ;;  %v332_v63 = vmul.f32 %v328_v55, %v324_v52  ;;  %v333_v59 = vmul.f32 %v329_v56, %v325_v44  ;;  %v334_v0 = vmul.f32 %v330_v57, %v326_v54 }
 0x139   :  { %347 = vst [vmem:[%s689_s6] sm:$0xff] %v331_v58 }
 0x13a   :  { %348 = vst [vmem:[%s689_s6 + $0x8] sm:$0xff] %v332_v63 }
 0x13b   :  { %349 = vst [vmem:[%s689_s6 + $0x10] sm:$0xff] %v333_v59 }
 0x13c   :  { %350 = vst [vmem:[%s689_s6 + $0x18] sm:$0xff] %v334_v0 }
 0x13d   :  { %375 = vsyncpa [#allocation4], 1 }
 0x13e   :  { %376 = vsyncpa [#allocation6], 1 }
 0x13f   :  { %377 = vsyncpa [#allocation9], 1 }

</bundles_post_ra>
